<compile_context>
chip_gen: v5e
topology: v5e:2x2
jax: 0.10.0
libtpu: 0.0.40
codegen_flags: <defaults>
</compile_context>

<pallas_src>
import math
from functools import partial

import jax
import jax.numpy as jnp
from jax import lax
from jax.experimental import pallas as pl
from jax.experimental.pallas import tpu as pltpu


def _attention_core(q_ref, k_ref, v_ref,
                    wq_ref, bq_ref, wk_ref, bk_ref, wv_ref, bv_ref,
                    ctx_ref, attw_ref, *, scale, kn_valid,
                    add_mask, keep_mask):
    B, QNp, Cq = q_ref.shape
    _, KNp, Ck = k_ref.shape
    Cv = v_ref.shape[-1]
    QKp = wq_ref.shape[-1]
    Vp = wv_ref.shape[-1]

    # Linear projections as single (B*N, C) @ (C, out) MXU matmuls.
    q2 = q_ref[...].reshape(B * QNp, Cq)
    k2 = k_ref[...].reshape(B * KNp, Ck)
    v2 = v_ref[...].reshape(B * KNp, Cv)

    pq = jnp.dot(q2, wq_ref[...], preferred_element_type=jnp.float32) + bq_ref[...]
    pk = jnp.dot(k2, wk_ref[...], preferred_element_type=jnp.float32) + bk_ref[...]
    pv = jnp.dot(v2, wv_ref[...], preferred_element_type=jnp.float32) + bv_ref[...]

    # Fold the 1/sqrt(d) scale into the (much smaller) projected queries.
    pq = (pq * scale).reshape(B, QNp, QKp)
    pk = pk.reshape(B, KNp, QKp)
    pv = pv.reshape(B, KNp, Vp)

    # Alignment scores: contraction on the projection dim, no explicit
    # transpose (feeds the MXU directly).
    scores = jnp.einsum('bqd,bkd->bqk', pq, pk,
                        preferred_element_type=jnp.float32)

    if add_mask is not None:
        # Additive user mask already carries -1e9 on padded KN positions too.
        scores = scores + add_mask
    elif kn_valid != KNp:
        # No user mask: only the zero-padded KN columns must be excluded.
        col = lax.broadcasted_iota(jnp.int32, (1, 1, KNp), 2)
        scores = scores + jnp.where(col >= kn_valid,
                                    jnp.float32(-1e9), jnp.float32(0.0))

    # Softmax along the key axis.
    s_max = jnp.max(scores, axis=-1, keepdims=True)
    e = jnp.exp(scores - s_max)
    denom = jnp.sum(e, axis=-1, keepdims=True)
    inv = pl.reciprocal(denom, approx=True)
    inv = inv * (2.0 - denom * inv)          # one Newton step -> full f32 accuracy
    w = e * inv

    if keep_mask is not None:
        # Post-softmax multiplicative mask (matches the PyTorch module).
        w = w * keep_mask

    ctx_ref[...] = jnp.einsum('bqk,bkd->bqd', w, pv,
                              preferred_element_type=jnp.float32)
    attw_ref[...] = w


def _attn_kernel_masked(q_ref, k_ref, v_ref, addm_ref, keep_ref,
                        wq_ref, bq_ref, wk_ref, bk_ref, wv_ref, bv_ref,
                        ctx_ref, attw_ref, *, scale, kn_valid):
    _attention_core(q_ref, k_ref, v_ref, wq_ref, bq_ref, wk_ref, bk_ref,
                    wv_ref, bv_ref, ctx_ref, attw_ref, scale=scale,
                    kn_valid=kn_valid, add_mask=addm_ref[...],
                    keep_mask=keep_ref[...])


def _attn_kernel_nomask(q_ref, k_ref, v_ref,
                        wq_ref, bq_ref, wk_ref, bk_ref, wv_ref, bv_ref,
                        ctx_ref, attw_ref, *, scale, kn_valid):
    _attention_core(q_ref, k_ref, v_ref, wq_ref, bq_ref, wk_ref, bk_ref,
                    wv_ref, bv_ref, ctx_ref, attw_ref, scale=scale,
                    kn_valid=kn_valid, add_mask=None, keep_mask=None)


def _round_up(x, m):
    return ((x + m - 1) // m) * m


def attention_layer(query, key, value, params, mask=None, *,
                    qk_proj_dims, v_proj_dims=None):
    """params = (wq, bq, wk, bk, wv, bv); weights (in, out), bias (1, out)."""
    if v_proj_dims is None:
        v_proj_dims = qk_proj_dims
    B, QN, Cq = query.shape
    _, KN, Ck = key.shape
    Cv = value.shape[-1]
    wq, bq, wk, bk, wv, bv = params

    # Lane/sublane-dense padded extents so all HBM stores are full-width.
    QNp = _round_up(QN, 8)
    KNp = _round_up(KN, 128)
    Vp = _round_up(v_proj_dims, 128)

    qp = query if QNp == QN else jnp.pad(query, ((0, 0), (0, QNp - QN), (0, 0)))
    kp = key if KNp == KN else jnp.pad(key, ((0, 0), (0, KNp - KN), (0, 0)))
    vp = value if KNp == KN else jnp.pad(value, ((0, 0), (0, KNp - KN), (0, 0)))
    wvp = wv if Vp == v_proj_dims else jnp.pad(wv, ((0, 0), (0, Vp - v_proj_dims)))
    bvp = bv if Vp == v_proj_dims else jnp.pad(bv, ((0, 0), (0, Vp - v_proj_dims)))

    scale = 1.0 / math.sqrt(float(qk_proj_dims))

    out_shapes = (
        jax.ShapeDtypeStruct((B, QNp, Vp), jnp.float32),
        jax.ShapeDtypeStruct((B, QNp, KNp), jnp.float32),
    )
    vmem = pl.BlockSpec(memory_space=pltpu.MemorySpace.VMEM)

    if mask is not None:
        keep = mask.astype(jnp.float32).reshape(B, 1, KN)
        if KNp != KN:
            keep = jnp.pad(keep, ((0, 0), (0, 0), (0, KNp - KN)))
        # 0.0 where kept, -1e9 where user-masked or KN-padded.
        add_mask = (1.0 - keep) * jnp.float32(-1.0e9)
        inputs = (qp, kp, vp, add_mask, keep, wq, bq, wk, bk, wvp, bvp)
        kern = partial(_attn_kernel_masked, scale=scale, kn_valid=KN)
    else:
        inputs = (qp, kp, vp, wq, bq, wk, bk, wvp, bvp)
        kern = partial(_attn_kernel_nomask, scale=scale, kn_valid=KN)

    ctx_p, attw_p = pl.pallas_call(
        kern,
        out_shape=out_shapes,
        in_specs=[vmem] * len(inputs),
        out_specs=(vmem, vmem),
    )(*inputs)

    # Slice away the lane/sublane padding (cheap XLA slice).
    return ctx_p[:, :QN, :v_proj_dims], attw_p[:, :QN, :KN]


def init_params(key, q_in, k_in, v_in, qk_proj, v_proj):
    """Deterministic init mimicking nn.Linear's uniform(-1/sqrt(in), 1/sqrt(in))."""
    keys = jax.random.split(key, 6)

    def lin(kw, kb, d_in, d_out):
        bound = 1.0 / jnp.sqrt(jnp.float32(d_in))
        w = jax.random.uniform(kw, (d_in, d_out), jnp.float32, -bound, bound)
        b = jax.random.uniform(kb, (1, d_out), jnp.float32, -bound, bound)
        return w, b

    wq, bq = lin(keys[0], keys[1], q_in, qk_proj)
    wk, bk = lin(keys[2], keys[3], k_in, qk_proj)
    wv, bv = lin(keys[4], keys[5], v_in, v_proj)
    return wq, bq, wk, bk, wv, bv


def _reference(query, key, value, params, mask, qk_proj_dims):
    wq, bq, wk, bk, wv, bv = params
    pq = query @ wq + bq
    pk = key @ wk + bk
    pv = value @ wv + bv
    scores = jnp.einsum('bqd,bkd->bqk', pq, pk) / jnp.sqrt(jnp.float32(qk_proj_dims))
    if mask is not None:
        m = jnp.broadcast_to(mask[:, None, :], scores.shape).astype(jnp.float32)
        scores = jnp.where(m == 0.0, -1.0e9, scores)
    w = jax.nn.softmax(scores, axis=-1)
    if mask is not None:
        w = w * m
    ctx = jnp.einsum('bqk,bkd->bqd', w, pv)
    return ctx, w


if __name__ == "__main__":
    B, QN, KN = 2, 8, 10
    Q_IN, K_IN, V_IN = 16, 12, 20
    QK_PROJ, V_PROJ = 32, 24

    root = jax.random.PRNGKey(0)
    k_params, k_q, k_k, k_v, k_m = jax.random.split(root, 5)

    params = init_params(k_params, Q_IN, K_IN, V_IN, QK_PROJ, V_PROJ)
    query = jax.random.normal(k_q, (B, QN, Q_IN), jnp.float32)
    key = jax.random.normal(k_k, (B, KN, K_IN), jnp.float32)
    value = jax.random.normal(k_v, (B, KN, V_IN), jnp.float32)
    mask = (jax.random.uniform(k_m, (B, KN)) > 0.3).astype(jnp.float32)
    mask = mask.at[:, 0].set(1.0)  # keep at least one valid position per row

    # Masked path (additive mask + post-softmax multiply).
    ctx, attw = attention_layer(query, key, value, params, mask,
                                qk_proj_dims=QK_PROJ, v_proj_dims=V_PROJ)
    jax.block_until_ready((ctx, attw))

    # No-mask path (specialized kernel variant, no mask DMA / multiply).
    ctx_nm, attw_nm = attention_layer(query, key, value, params, None,
                                      qk_proj_dims=QK_PROJ, v_proj_dims=V_PROJ)
    jax.block_until_ready((ctx_nm, attw_nm))

    # Correctness check vs. pure-JAX reference.
    ref_ctx, ref_w = _reference(query, key, value, params, mask, QK_PROJ)
    assert jnp.allclose(ctx, ref_ctx, atol=1e-4, rtol=1e-4)
    assert jnp.allclose(attw, ref_w, atol=1e-4, rtol=1e-4)
    ref_ctx_nm, ref_w_nm = _reference(query, key, value, params, None, QK_PROJ)
    assert jnp.allclose(ctx_nm, ref_ctx_nm, atol=1e-4, rtol=1e-4)
    assert jnp.allclose(attw_nm, ref_w_nm, atol=1e-4, rtol=1e-4)

    print("KERNEL_OK")
</pallas_src>

<mosaic_0001>
module attributes {stable_mosaic.version = 11 : i64} {
  func.func @_attn_kernel_masked(%arg0: memref<2x8x16xf32, #tpu.memory_space<vmem>>, %arg1: memref<2x128x12xf32, #tpu.memory_space<vmem>>, %arg2: memref<2x128x20xf32, #tpu.memory_space<vmem>>, %arg3: memref<2x1x128xf32, #tpu.memory_space<vmem>>, %arg4: memref<2x1x128xf32, #tpu.memory_space<vmem>>, %arg5: memref<16x32xf32, #tpu.memory_space<vmem>>, %arg6: memref<1x32xf32, #tpu.memory_space<vmem>>, %arg7: memref<12x32xf32, #tpu.memory_space<vmem>>, %arg8: memref<1x32xf32, #tpu.memory_space<vmem>>, %arg9: memref<20x128xf32, #tpu.memory_space<vmem>>, %arg10: memref<1x128xf32, #tpu.memory_space<vmem>>, %arg11: memref<2x8x128xf32, #tpu.memory_space<vmem>>, %arg12: memref<2x8x128xf32, #tpu.memory_space<vmem>>) attributes {dimension_semantics = [], scalar_prefetch = 0 : i64, scratch_operands = 0 : i64, tpu.core_type = #tpu.core_type<tc>} {
    %c0 = arith.constant 0 : index
    %c0_0 = arith.constant 0 : index
    %c0_1 = arith.constant 0 : index
    %0 = vector.load %arg3[%c0, %c0_0, %c0_1] : memref<2x1x128xf32, #tpu.memory_space<vmem>>, vector<2x1x128xf32>
    %c0_2 = arith.constant 0 : index
    %c0_3 = arith.constant 0 : index
    %c0_4 = arith.constant 0 : index
    %1 = vector.load %arg4[%c0_2, %c0_3, %c0_4] : memref<2x1x128xf32, #tpu.memory_space<vmem>>, vector<2x1x128xf32>
    %c0_5 = arith.constant 0 : index
    %c0_6 = arith.constant 0 : index
    %c0_7 = arith.constant 0 : index
    %2 = vector.load %arg0[%c0_5, %c0_6, %c0_7] : memref<2x8x16xf32, #tpu.memory_space<vmem>>, vector<2x8x16xf32>
    %3 = vector.shape_cast %2 : vector<2x8x16xf32> to vector<16x16xf32>
    %c0_8 = arith.constant 0 : index
    %c0_9 = arith.constant 0 : index
    %c0_10 = arith.constant 0 : index
    %4 = vector.load %arg1[%c0_8, %c0_9, %c0_10] : memref<2x128x12xf32, #tpu.memory_space<vmem>>, vector<2x128x12xf32>
    %5 = vector.shape_cast %4 : vector<2x128x12xf32> to vector<256x12xf32>
    %c0_11 = arith.constant 0 : index
    %c0_12 = arith.constant 0 : index
    %c0_13 = arith.constant 0 : index
    %6 = vector.load %arg2[%c0_11, %c0_12, %c0_13] : memref<2x128x20xf32, #tpu.memory_space<vmem>>, vector<2x128x20xf32>
    %7 = vector.shape_cast %6 : vector<2x128x20xf32> to vector<256x20xf32>
    %c0_14 = arith.constant 0 : index
    %c0_15 = arith.constant 0 : index
    %8 = vector.load %arg5[%c0_14, %c0_15] : memref<16x32xf32, #tpu.memory_space<vmem>>, vector<16x32xf32>
    %cst = arith.constant dense<0.000000e+00> : vector<16x32xf32>
    %9 = tpu.matmul %3, %8, %cst {dimension_numbers = #tpu.dot_dimension_numbers<[1], [0], [0], [1], [0, 0, 1, 1], [], []>} : vector<16x16xf32>, vector<16x32xf32>, vector<16x32xf32> -> vector<16x32xf32>
    %c0_16 = arith.constant 0 : index
    %c0_17 = arith.constant 0 : index
    %10 = vector.load %arg6[%c0_16, %c0_17] : memref<1x32xf32, #tpu.memory_space<vmem>>, vector<1x32xf32>
    %11 = vector.broadcast %10 : vector<1x32xf32> to vector<16x32xf32>
    %12 = arith.addf %9, %11 : vector<16x32xf32>
    %c0_18 = arith.constant 0 : index
    %c0_19 = arith.constant 0 : index
    %13 = vector.load %arg7[%c0_18, %c0_19] : memref<12x32xf32, #tpu.memory_space<vmem>>, vector<12x32xf32>
    %cst_20 = arith.constant dense<0.000000e+00> : vector<256x32xf32>
    %14 = tpu.matmul %5, %13, %cst_20 {dimension_numbers = #tpu.dot_dimension_numbers<[1], [0], [0], [1], [0, 0, 1, 1], [], []>} : vector<256x12xf32>, vector<12x32xf32>, vector<256x32xf32> -> vector<256x32xf32>
    %c0_21 = arith.constant 0 : index
    %c0_22 = arith.constant 0 : index
    %15 = vector.load %arg8[%c0_21, %c0_22] : memref<1x32xf32, #tpu.memory_space<vmem>>, vector<1x32xf32>
    %16 = vector.broadcast %15 : vector<1x32xf32> to vector<256x32xf32>
    %17 = arith.addf %14, %16 : vector<256x32xf32>
    %c0_23 = arith.constant 0 : index
    %c0_24 = arith.constant 0 : index
    %18 = vector.load %arg9[%c0_23, %c0_24] : memref<20x128xf32, #tpu.memory_space<vmem>>, vector<20x128xf32>
    %cst_25 = arith.constant dense<0.000000e+00> : vector<256x128xf32>
    %19 = tpu.matmul %7, %18, %cst_25 {dimension_numbers = #tpu.dot_dimension_numbers<[1], [0], [0], [1], [0, 0, 1, 1], [], []>} : vector<256x20xf32>, vector<20x128xf32>, vector<256x128xf32> -> vector<256x128xf32>
    %c0_26 = arith.constant 0 : index
    %c0_27 = arith.constant 0 : index
    %20 = vector.load %arg10[%c0_26, %c0_27] : memref<1x128xf32, #tpu.memory_space<vmem>>, vector<1x128xf32>
    %21 = vector.broadcast %20 : vector<1x128xf32> to vector<256x128xf32>
    %22 = arith.addf %19, %21 : vector<256x128xf32>
    %cst_28 = arith.constant 0.176776692 : f32
    %23 = vector.broadcast %cst_28 : f32 to vector<16x32xf32>
    %24 = arith.mulf %12, %23 : vector<16x32xf32>
    %25 = vector.shape_cast %24 : vector<16x32xf32> to vector<2x8x32xf32>
    %26 = vector.shape_cast %17 : vector<256x32xf32> to vector<2x128x32xf32>
    %27 = vector.shape_cast %22 : vector<256x128xf32> to vector<2x128x128xf32>
    "tpu.trace_start"() <{level = 10 : i32, message = "bqd,bkd->bqk"}> : () -> ()
    %cst_29 = arith.constant dense<0.000000e+00> : vector<2x8x128xf32>
    %28 = tpu.matmul %25, %26, %cst_29 {dimension_numbers = #tpu.dot_dimension_numbers<[2], [2], [1], [1], [0, 0, 0, 1, 1, 1], [0], [0]>} : vector<2x8x32xf32>, vector<2x128x32xf32>, vector<2x8x128xf32> -> vector<2x8x128xf32>
    "tpu.trace_stop"() : () -> ()
    %29 = vector.broadcast %0 : vector<2x1x128xf32> to vector<2x8x128xf32>
    %30 = arith.addf %28, %29 : vector<2x8x128xf32>
    %cst_30 = arith.constant dense<0xFF800000> : vector<2x8xf32>
    %31 = vector.multi_reduction <maximumf>, %30, %cst_30 [2] : vector<2x8x128xf32> to vector<2x8xf32>
    %32 = vector.shape_cast %31 : vector<2x8xf32> to vector<2x8x1xf32>
    %33 = vector.broadcast %32 : vector<2x8x1xf32> to vector<2x8x128xf32>
    %34 = arith.subf %30, %33 : vector<2x8x128xf32>
    %35 = math.exp %34 : vector<2x8x128xf32>
    %cst_31 = arith.constant dense<0.000000e+00> : vector<2x8xf32>
    %36 = vector.multi_reduction <add>, %35, %cst_31 [2] : vector<2x8x128xf32> to vector<2x8xf32>
    %37 = vector.shape_cast %36 : vector<2x8xf32> to vector<2x8x1xf32>
    %38 = tpu.reciprocal %37 {approx = true} : vector<2x8x1xf32> -> vector<2x8x1xf32>
    %39 = arith.mulf %37, %38 : vector<2x8x1xf32>
    %cst_32 = arith.constant 2.000000e+00 : f32
    %40 = vector.broadcast %cst_32 : f32 to vector<2x8x1xf32>
    %41 = arith.subf %40, %39 : vector<2x8x1xf32>
    %42 = arith.mulf %38, %41 : vector<2x8x1xf32>
    %43 = vector.broadcast %42 : vector<2x8x1xf32> to vector<2x8x128xf32>
    %44 = arith.mulf %35, %43 : vector<2x8x128xf32>
    %45 = vector.broadcast %1 : vector<2x1x128xf32> to vector<2x8x128xf32>
    %46 = arith.mulf %44, %45 : vector<2x8x128xf32>
    "tpu.trace_start"() <{level = 10 : i32, message = "bqk,bkd->bqd"}> : () -> ()
    %cst_33 = arith.constant dense<0.000000e+00> : vector<2x8x128xf32>
    %47 = tpu.matmul %46, %27, %cst_33 {dimension_numbers = #tpu.dot_dimension_numbers<[2], [1], [1], [2], [0, 0, 0, 1, 1, 2], [0], [0]>} : vector<2x8x128xf32>, vector<2x128x128xf32>, vector<2x8x128xf32> -> vector<2x8x128xf32>
    "tpu.trace_stop"() : () -> ()
    %c0_34 = arith.constant 0 : index
    %c0_35 = arith.constant 0 : index
    %c0_36 = arith.constant 0 : index
    %48 = vector.load %arg11[%c0_34, %c0_35, %c0_36] : memref<2x8x128xf32, #tpu.memory_space<vmem>>, vector<2x8x128xf32>
    tpu.vector_store %arg11[%c0_34, %c0_35, %c0_36], %47 {strides = array<i32>} : memref<2x8x128xf32, #tpu.memory_space<vmem>>, vector<2x8x128xf32>,
    %c0_37 = arith.constant 0 : index
    %c0_38 = arith.constant 0 : index
    %c0_39 = arith.constant 0 : index
    %49 = vector.load %arg12[%c0_37, %c0_38, %c0_39] : memref<2x8x128xf32, #tpu.memory_space<vmem>>, vector<2x8x128xf32>
    tpu.vector_store %arg12[%c0_37, %c0_38, %c0_39], %46 {strides = array<i32>} : memref<2x8x128xf32, #tpu.memory_space<vmem>>, vector<2x8x128xf32>,
    return
  }
}

</mosaic_0001>

<bundles_post_ra>
// kernel: tpu_custom_call.1
= control target key start
LH: loop header
LB: loop body
LE: loop exit
PB: predicated region body
PF: predicated region fallthrough
CT: control target
= control target key end

     0   :  { %18 = vsyncpa [#allocation3], 0  ;;  %vm251_vm0 = vcmask 1043456   ;;  %vm118_vm1 = vcmask 130048   ;;  %vm154_vm2 = vcmask 97280   ;;  %s1578_s0 = inlined_call_operand.vmem [shape: f32[2,8,16], index: 0, kind: input, shape index: {}]   ;;  %s1579_s1 = inlined_call_operand.vmem [shape: f32[2,128,12], index: 1, kind: input, shape index: {}]   ;;  %s1580_s2 = inlined_call_operand.vmem [shape: f32[2,128,20], index: 2, kind: input, shape index: {}]   ;;  %s1581_s3 = inlined_call_operand.vmem [shape: f32[2,1,128], index: 3, kind: input, shape index: {}]   ;;  %s1582_s4 = inlined_call_operand.vmem [shape: f32[2,1,128], index: 4, kind: input, shape index: {}]   ;;  %s1583_s5 = inlined_call_operand.vmem [shape: f32[16,32], index: 5, kind: input, shape index: {}]   ;;  %s1584_s6 = inlined_call_operand.vmem [shape: f32[1,32], index: 6, kind: input, shape index: {}]   ;;  %s1585_s7 = inlined_call_operand.vmem [shape: f32[12,32], index: 7, kind: input, shape index: {}]   ;;  %s1586_s8 = inlined_call_operand.vmem [shape: f32[1,32], index: 8, kind: input, shape index: {}]   ;;  %s1587_s9 = inlined_call_operand.vmem [shape: f32[20,128], index: 9, kind: input, shape index: {}]   ;;  %s1588_s10 = inlined_call_operand.vmem [shape: f32[1,128], index: 10, kind: input, shape index: {}]   ;;  %s1589_s11 = inlined_call_operand.hbm [shape: f32[2,8,128], index: 11, kind: output, shape index: {0}]   ;;  %s1590_s12 = inlined_call_operand.hbm [shape: f32[2,8,128], index: 12, kind: output, shape index: {1}]  }
   0x1   :  { %v113_v0 = vld [vmem:[%s1583_s5 + $0x8] sm:$0xff]  ;;  %v112_v2 = vld [vmem:[%s1583_s5] sm:$0xff] }
   0x2   :  { %v149_v1 = vld [vmem:[%s1585_s7 + $0x8] sm:$0xf]  ;;  %139 = vmatpush.msra.mxu0 %v113_v0  ;;  %v148_v3 = vld [vmem:[%s1585_s7] sm:$0xff] }
   0x3   :  { %953 = vmatpush.msk.msra.mxu1 %vm251_vm0, %v149_v1  ;;  %v46_v4 = vld [vmem:[%s1578_s0] sm:$0xff] }
   0x4   :  { %v60_v5 = vld [vmem:[%s1579_s1 + $0x60] sm:$0xff]  ;;  %140 = vmatpush.msra.mxu0 %v112_v2 }
   0x5   :  { %954 = vmatpush.msra.mxu1 %v148_v3  ;;  %851 = vmatmul.msk.f32.vlgmr.msra.gmra.mxu0 %vm118_vm1, %v46_v4 }
   0x6   :  { %866 = vmatmul.msk.f32.vlgmr.msra.gmra.mxu1 %vm154_vm2, %v60_v5  ;;  %853 = vmatpush.msk.msrb.mxu0 %vm251_vm0, %v149_v1 }
   0x8   :  { %270 = vmatpush.msrb.mxu0 %v148_v3 }
   0x9   :  { %19 = vsyncpa [#allocation5], 0  ;;  %v47_v6 = vld [vmem:[%s1578_s0 + $0x8] sm:$0xff]  ;;  %v48_v8 = vld [vmem:[%s1579_s1] sm:$0xff]  ;;  %vm375_vm3 = vcmask 162816   ;;  %vm596_vm4 = vcmask 261120  }
   0xa   :  { %v61_v7 = vld [vmem:[%s1579_s1 + $0x68] sm:$0xff]  ;;  %v62_v9 = vld [vmem:[%s1579_s1 + $0x70] sm:$0xff]  ;;  %v63_v11 = vld [vmem:[%s1579_s1 + $0x78] sm:$0xff]  ;;  %s1029_s19 = smov [#allocation4]   ;;  %s1030_s22 = smov 128  }
   0xb   :  { %v49_v10 = vld [vmem:[%s1579_s1 + $0x8] sm:$0xff]  ;;  %v50_v12 = vld [vmem:[%s1579_s1 + $0x10] sm:$0xff]  ;;  %v64_v13 = vld [vmem:[%s1579_s1 + $0x80] sm:$0xff]  ;;  %s832_s20 = sshll.u32 %s1029_s19, 4  ;;  %s1031_s23 = smov 8   ;;  %s833_s20 = int_to_ptr.vmem [resolvable:$true] %s832_s20 }
   0xc   :  { %v51_v14 = vld [vmem:[%s1579_s1 + $0x18] sm:$0xff]  ;;  %v65_v15 = vld [vmem:[%s1579_s1 + $0x88] sm:$0xff]  ;;  %v52_v16 = vld [vmem:[%s1579_s1 + $0x20] sm:$0xff]  ;;  %s1032_s24 = smov [#allocation2]   ;;  %s821_s26 = sshll.u32 %s1589_s11, 4  ;;  %s822_s26 = int_to_ptr.hbm [resolvable:$true] %s821_s26 }
   0xd   :  { %852 = vmatmul.msk.f32.gmra.mxu0 %vm118_vm1, %v47_v6  ;;  %v66_v17 = vld [vmem:[%s1579_s1 + $0x90] sm:$0xff]  ;;  %v53_v18 = vld [vmem:[%s1579_s1 + $0x28] sm:$0xff]  ;;  %v67_v19 = vld [vmem:[%s1579_s1 + $0x98] sm:$0xff] }
   0xe   :  { %867 = vmatmul.msk.f32.gmra.mxu1 %vm154_vm2, %v61_v7  ;;  %v54_v20 = vld [vmem:[%s1579_s1 + $0x30] sm:$0xff]  ;;  %v68_v21 = vld [vmem:[%s1579_s1 + $0xa0] sm:$0xff]  ;;  %v55_v22 = vld [vmem:[%s1579_s1 + $0x38] sm:$0xff] }
   0xf   :  { %v69_v23 = vld [vmem:[%s1579_s1 + $0xa8] sm:$0xff]  ;;  %v56_v24 = vld [vmem:[%s1579_s1 + $0x40] sm:$0xff]  ;;  %v70_v25 = vld [vmem:[%s1579_s1 + $0xb0] sm:$0xff] }
  0x10   :  { %v57_v26 = vld [vmem:[%s1579_s1 + $0x48] sm:$0xff]  ;;  %v71_v27 = vld [vmem:[%s1579_s1 + $0xb8] sm:$0xff]  ;;  %v58_v28 = vld [vmem:[%s1579_s1 + $0x50] sm:$0xff] }
  0x11   :  { %v72_v29 = vld [vmem:[%s1579_s1 + $0xc0] sm:$0xff]  ;;  %v59_v30 = vld [vmem:[%s1579_s1 + $0x58] sm:$0xff]  ;;  %v73_v31 = vld [vmem:[%s1579_s1 + $0xc8] sm:$0xff] }
  0x12   :  { %v370_v32 = vld [vmem:[%s1587_s9 + $0x10] sm:$0xf]  ;;  %v369_v33 = vld [vmem:[%s1587_s9 + $0x8] sm:$0xff]  ;;  %v368_v34 = vld [vmem:[%s1587_s9] sm:$0xff] }
  0x13   :  { %955 = vmatpush.msk.msra.mxu3 %vm251_vm0, %v370_v32  ;;  %886 = vmatpush.msk.msra.mxu2 %vm251_vm0, %v370_v32  ;;  %v101_v35 = vld [vmem:[%s1580_s2 + $0xa8] sm:$0xff]  ;;  %v74_v36 = vld [vmem:[%s1579_s1 + $0xd0] sm:$0xff]  ;;  %v75_v38 = vld [vmem:[%s1579_s1 + $0xd8] sm:$0xff] }
  0x14   :  { %v102_v37 = vld [vmem:[%s1580_s2 + $0xb0] sm:$0xff]  ;;  %v103_v39 = vld [vmem:[%s1580_s2 + $0xb8] sm:$0xff]  ;;  %v76_v42 = vld [vmem:[%s1579_s1 + $0xe0] sm:$0xff] }
  0x15   :  { %854 = vmatmul.msk.f32.vlgmr.msrb.gmra.mxu0 %vm154_vm2, %v48_v8  ;;  %956 = vmatpush.msra.mxu3 %v369_v33  ;;  %v1262_v43 = vld [vmem:[%s1584_s6] ss:$0 sm:$0xff]  ;;  %v77_v47 = vld [vmem:[%s1579_s1 + $0xe8] sm:$0xff]  ;;  %v78_v52 = vld [vmem:[%s1579_s1 + $0xf0] sm:$0xff] }
  0x16   :  { %868 = vmatmul.msk.f32.gmra.mxu1 %vm154_vm2, %v62_v9  ;;  %489 = vmatpush.msra.mxu2 %v369_v33  ;;  %v104_v44 = vld [vmem:[%s1580_s2 + $0xc0] sm:$0xff]  ;;  %v105_v49 = vld [vmem:[%s1580_s2 + $0xc8] sm:$0xff]  ;;  %v106_v54 = vld [vmem:[%s1580_s2 + $0xd0] sm:$0xff] }
  0x17   :  { %957 = vmatpush.msra.mxu3 %v368_v34  ;;  %v1288_v53 = vld [vmem:[%s1586_s8] ss:$0 sm:$0xff]  ;;  %v79_v57 = vld [vmem:[%s1579_s1 + $0xf8] sm:$0xff]  ;;  %v109_v4 = vld [vmem:[%s1580_s2 + $0xe8] sm:$0xff] }
  0x18   :  { %490 = vmatpush.msra.mxu2 %v368_v34  ;;  %908 = vmatmul.msk.f32.vlgmr.msra.gmra.mxu3 %vm375_vm3, %v101_v35  ;;  %v107_v60 = vld [vmem:[%s1580_s2 + $0xd8] sm:$0xff]  ;;  %v108_v1 = vld [vmem:[%s1580_s2 + $0xe0] sm:$0xff]  ;;  %v110_v7 = vld [vmem:[%s1580_s2 + $0xf0] sm:$0xff] }
  0x19   :  { %v81_v35 = vld [vmem:[%s1580_s2 + $0x8] sm:$0xff] }
  0x1d   :  { %855 = vmatmul.msk.f32.gmra.mxu0 %vm154_vm2, %v49_v10  ;;  %v111_v10 = vld [vmem:[%s1580_s2 + $0xf8] sm:$0xff] }
  0x1e   :  { %869 = vmatmul.msk.f32.gmra.mxu1 %vm154_vm2, %v63_v11 }
  0x20   :  { %909 = vmatmul.msk.f32.gmra.mxu3 %vm375_vm3, %v102_v37 }
  0x25   :  { %856 = vmatmul.msk.f32.gmra.mxu0 %vm154_vm2, %v50_v12 }
  0x26   :  { %870 = vmatmul.msk.f32.gmra.mxu1 %vm154_vm2, %v64_v13 }
  0x28   :  { %910 = vmatmul.msk.f32.gmra.mxu3 %vm375_vm3, %v103_v39 }
  0x2d   :  { %857 = vmatmul.msk.f32.gmra.mxu0 %vm154_vm2, %v51_v14 }
  0x2e   :  { %871 = vmatmul.msk.f32.gmra.mxu1 %vm154_vm2, %v65_v15 }
  0x30   :  { %911 = vmatmul.msk.f32.gmra.mxu3 %vm375_vm3, %v104_v44 }
  0x35   :  { %858 = vmatmul.msk.f32.gmra.mxu0 %vm154_vm2, %v52_v16 }
  0x36   :  { %872 = vmatmul.msk.f32.gmra.mxu1 %vm154_vm2, %v66_v17 }
  0x38   :  { %912 = vmatmul.msk.f32.gmra.mxu3 %vm375_vm3, %v105_v49 }
  0x3d   :  { %859 = vmatmul.msk.f32.gmra.mxu0 %vm154_vm2, %v53_v18 }
  0x3e   :  { %873 = vmatmul.msk.f32.gmra.mxu1 %vm154_vm2, %v67_v19 }
  0x40   :  { %913 = vmatmul.msk.f32.gmra.mxu3 %vm375_vm3, %v106_v54 }
  0x45   :  { %860 = vmatmul.msk.f32.gmra.mxu0 %vm154_vm2, %v54_v20 }
  0x46   :  { %874 = vmatmul.msk.f32.gmra.mxu1 %vm154_vm2, %v68_v21 }
  0x48   :  { %914 = vmatmul.msk.f32.gmra.mxu3 %vm375_vm3, %v107_v60 }
  0x4d   :  { %861 = vmatmul.msk.f32.gmra.mxu0 %vm154_vm2, %v55_v22 }
  0x4e   :  { %875 = vmatmul.msk.f32.gmra.mxu1 %vm154_vm2, %v69_v23 }
  0x50   :  { %915 = vmatmul.msk.f32.gmra.mxu3 %vm375_vm3, %v108_v1 }
  0x55   :  { %862 = vmatmul.msk.f32.gmra.mxu0 %vm154_vm2, %v56_v24 }
  0x56   :  { %876 = vmatmul.msk.f32.gmra.mxu1 %vm154_vm2, %v70_v25 }
  0x58   :  { %916 = vmatmul.msk.f32.gmra.mxu3 %vm375_vm3, %v109_v4 }
  0x5d   :  { %863 = vmatmul.msk.f32.gmra.mxu0 %vm154_vm2, %v57_v26 }
  0x5e   :  { %877 = vmatmul.msk.f32.gmra.mxu1 %vm154_vm2, %v71_v27 }
  0x60   :  { %917 = vmatmul.msk.f32.gmra.mxu3 %vm375_vm3, %v110_v7 }
  0x65   :  { %864 = vmatmul.msk.f32.gmra.mxu0 %vm154_vm2, %v58_v28 }
  0x66   :  { %878 = vmatmul.msk.f32.gmra.mxu1 %vm154_vm2, %v72_v29 }
  0x68   :  { %918 = vmatmul.msk.f32.gmra.mxu3 %vm375_vm3, %v111_v10 }
  0x6d   :  { %865 = vmatmul.msk.f32.gmra.mxu0 %vm154_vm2, %v59_v30 }
  0x6e   :  { %879 = vmatmul.msk.f32.gmra.mxu1 %vm154_vm2, %v73_v31  ;;  %v80_v31 = vld [vmem:[%s1580_s2] sm:$0xff] }
  0x6f   :  { %887 = vmatmul.msk.f32.vlgmr.msra.gmra.mxu2 %vm375_vm3, %v80_v31 }
  0x76   :  { %880 = vmatmul.msk.f32.gmra.mxu1 %vm154_vm2, %v74_v36 }
  0x77   :  { %888 = vmatmul.msk.f32.gmra.mxu2 %vm375_vm3, %v81_v35 }
  0x7e   :  { %881 = vmatmul.msk.f32.gmra.mxu1 %vm154_vm2, %v75_v38 }
  0x82   :  { %v1252_v40 = vpop.f32.mrf.mxu0 }
  0x83   :  { %v308_v41 = vpop.f32.mrf.mxu1 }
  0x84   :  { %v309_v0 = vadd.f32 %v1288_v53, %v308_v41  ;;  %v82_v41 = vld [vmem:[%s1580_s2 + $0x10] sm:$0xff] }
  0x85   :  { %889 = vmatmul.msk.f32.gmra.mxu2 %vm375_vm3, %v82_v41  ;;  %v965_v41 = vld [vmem:[%s1581_s3] ss:$0 sm:$0xff] }
  0x86   :  { %882 = vmatmul.msk.f32.gmra.mxu1 %vm154_vm2, %v76_v42 }
  0x8a   :  { %v145_v45 = vpop.f32.mrf.mxu0 }
  0x8b   :  { %v311_v46 = vpop.f32.mrf.mxu1  ;;  %v1271_v48 = vadd.f32 %v1262_v43, %v145_v45 }
  0x8c   :  { %v312_v63 = vadd.f32 %v1288_v53, %v311_v46 }
  0x8e   :  { %883 = vmatmul.msk.f32.gmra.mxu1 %vm154_vm2, %v77_v47  ;;  %v83_v47 = vld [vmem:[%s1580_s2 + $0x18] sm:$0xff] }
  0x8f   :  { %890 = vmatmul.msk.f32.gmra.mxu2 %vm375_vm3, %v83_v47 }
  0x92   :  { %v1278_v50 = vpop.f32.mrf.mxu0 }
  0x93   :  { %v314_v51 = vpop.f32.mrf.mxu1 }
  0x94   :  { %v315_v59 = vadd.f32 %v1288_v53, %v314_v51  ;;  %v143_v51 = vadd.f32 %v1262_v43, %v1252_v40 }
  0x96   :  { %884 = vmatmul.msk.f32.gmra.mxu1 %vm154_vm2, %v78_v52  ;;  %v273_v52 = vadd.f32 %v1288_v53, %v1278_v50  ;;  %v85_v50 = vld [vmem:[%s1580_s2 + $0x28] sm:$0xff] }
  0x9a   :  { %v1293_v55 = vpop.f32.mrf.mxu0 }
  0x9b   :  { %v317_v56 = vpop.f32.mrf.mxu1  ;;  %v1357_v28 = vpop.f32.mrf.mxu3  ;;  %v276_v49 = vadd.f32 %v1288_v53, %v1293_v55  ;;  %v84_v55 = vld [vmem:[%s1580_s2 + $0x20] sm:$0xff] }
  0x9c   :  { %v318_v58 = vadd.f32 %v1288_v53, %v317_v56  ;;  %v588_v56 = vmul.f32 0.17677669, %v143_v51  ;;  %891 = vmatmul.msk.f32.gmra.mxu2 %vm375_vm3, %v84_v55 }
  0x9e   :  { %885 = vmatmul.msk.f32.gmra.mxu1 %vm154_vm2, %v79_v57  ;;  %919 = vmatpush.xpose.msk.msrb.mxu3 %vm596_vm4, %v318_v58 }
  0xa2   :  { %920 = vmatpush.xpose.msk.msrb.mxu3 %vm596_vm4, %v315_v59  ;;  %v1307_v61 = vpop.f32.mrf.mxu0 }
  0xa3   :  { %v1309_v62 = vpop.f32.mrf.mxu1  ;;  %v1366_v32 = vpop.f32.mrf.mxu3  ;;  %v279_v45 = vadd.f32 %v1288_v53, %v1307_v61  ;;  %v86_v61 = vld [vmem:[%s1580_s2 + $0x30] sm:$0xff] }
  0xa4   :  { %892 = vmatmul.msk.f32.gmra.mxu2 %vm375_vm3, %v85_v50 }
  0xa6   :  { %921 = vmatpush.xpose.msk.msrb.mxu3 %vm596_vm4, %v312_v63 }
  0xaa   :  { %922 = vmatpush.xpose.msk.msrb.mxu3 %vm596_vm4, %v309_v0  ;;  %v281_v2 = vpop.f32.mrf.mxu0 }
  0xab   :  { %v1319_v3 = vpop.f32.mrf.mxu1  ;;  %v1376_v37 = vpop.f32.mrf.mxu3  ;;  %v282_v42 = vadd.f32 %v1288_v53, %v281_v2  ;;  %v87_v2 = vld [vmem:[%s1580_s2 + $0x38] sm:$0xff] }
  0xac   :  { %893 = vmatmul.msk.f32.gmra.mxu2 %vm375_vm3, %v86_v61 }
  0xb2   :  { %v284_v5 = vpop.f32.mrf.mxu0 }
  0xb3   :  { %v1325_v6 = vpop.f32.mrf.mxu1  ;;  %v285_v38 = vadd.f32 %v1288_v53, %v284_v5  ;;  %v1386_v44 = vpop.f32.mrf.mxu3 }
  0xb4   :  { %894 = vmatmul.msk.f32.gmra.mxu2 %vm375_vm3, %v87_v2 }
  0xba   :  { %v287_v8 = vpop.f32.mrf.mxu0 }
  0xbb   :  { %v1331_v9 = vpop.f32.mrf.mxu1  ;;  %v288_v36 = vadd.f32 %v1288_v53, %v287_v8  ;;  %v1402_v54 = vpop.f32.mrf.mxu3  ;;  %v88_v8 = vld [vmem:[%s1580_s2 + $0x40] sm:$0xff] }
  0xbc   :  { %895 = vmatmul.msk.f32.gmra.mxu2 %vm375_vm3, %v88_v8 }
  0xc2   :  { %v290_v11 = vpop.f32.mrf.mxu0 }
  0xc3   :  { %v1337_v12 = vpop.f32.mrf.mxu1  ;;  %v291_v33 = vadd.f32 %v1288_v53, %v290_v11  ;;  %v570_v43 = vpop.f32.mrf.mxu3 }
  0xca   :  { %v293_v13 = vpop.f32.mrf.mxu0 }
  0xcb   :  { %v1340_v14 = vpop.f32.mrf.mxu1  ;;  %v294_v29 = vadd.f32 %v1288_v53, %v293_v13  ;;  %v573_v0 = vpop.f32.mrf.mxu3 }
  0xd2   :  { %v296_v15 = vpop.f32.mrf.mxu0 }
  0xd3   :  { %v1342_v16 = vpop.f32.mrf.mxu1  ;;  %v297_v27 = vadd.f32 %v1288_v53, %v296_v15  ;;  %v576_v5 = vpop.f32.mrf.mxu3  ;;  %v89_v15 = vld [vmem:[%s1580_s2 + $0x48] sm:$0xff] }
  0xd4   :  { %v339_v11 = vadd.f32 %v1288_v53, %v1342_v16  ;;  %896 = vmatmul.msk.f32.gmra.mxu2 %vm375_vm3, %v89_v15  ;;  %v90_v16 = vld [vmem:[%s1580_s2 + $0x50] sm:$0xff] }
  0xda   :  { %v299_v17 = vpop.f32.mrf.mxu0 }
  0xdb   :  { %v1344_v18 = vpop.f32.mrf.mxu1  ;;  %v300_v25 = vadd.f32 %v1288_v53, %v299_v17  ;;  %v579_v13 = vpop.f32.mrf.mxu3  ;;  %v336_v17 = vadd.f32 %v1288_v53, %v1340_v14  ;;  %v327_v14 = vadd.f32 %v1288_v53, %v1325_v6 }
  0xdc   :  { %v342_v10 = vadd.f32 %v1288_v53, %v1344_v18  ;;  %v333_v18 = vadd.f32 %v1288_v53, %v1337_v12  ;;  %897 = vmatmul.msk.f32.gmra.mxu2 %vm375_vm3, %v90_v16  ;;  %v91_v12 = vld [vmem:[%s1580_s2 + $0x58] sm:$0xff] }
  0xe2   :  { %v302_v19 = vpop.f32.mrf.mxu0 }
  0xe3   :  { %v1346_v20 = vpop.f32.mrf.mxu1  ;;  %v303_v24 = vadd.f32 %v1288_v53, %v302_v19  ;;  %v582_v19 = vpop.f32.mrf.mxu3 }
  0xe4   :  { %v345_v7 = vadd.f32 %v1288_v53, %v1346_v20  ;;  %v330_v20 = vadd.f32 %v1288_v53, %v1331_v9  ;;  %v324_v9 = vadd.f32 %v1288_v53, %v1319_v3  ;;  %898 = vmatmul.msk.f32.gmra.mxu2 %vm375_vm3, %v91_v12  ;;  %v589_v3 = vmul.f32 0.17677669, %v1271_v48  ;;  %v93_v48 = vld [vmem:[%s1580_s2 + $0x68] sm:$0xff] }
  0xea   :  { %v305_v21 = vpop.f32.mrf.mxu0 }
  0xeb   :  { %v1348_v22 = vpop.f32.mrf.mxu1  ;;  %v306_v23 = vadd.f32 %v1288_v53, %v305_v21  ;;  %v1476_v21 = vld [vmem:[%s1588_s10] ss:$0 sm:$0xff]  ;;  %s834_s10 = sshll.u32 %s1590_s12, 4  ;;  %s835_s10 = int_to_ptr.hbm [resolvable:$true] %s834_s10 }
  0xec   :  { %v348_v4 = vadd.f32 %v1288_v53, %v1348_v22  ;;  %v585_v22 = vpop.f32.mrf.mxu3  ;;  %v562_v31 = vadd.f32 %v1476_v21, %v1376_v37  ;;  %v556_v35 = vadd.f32 %v1476_v21, %v1357_v28 }
  0xed   :  { %923 = vmatpush.xpose.msk.msrb.mxu3 %vm596_vm4, %v306_v23  ;;  %v586_v6 = vadd.f32 %v1476_v21, %v585_v22  ;;  %v321_v23 = vadd.f32 %v1288_v53, %v1309_v62  ;;  %v571_v62 = vadd.f32 %v1476_v21, %v570_v43  ;;  %v96_v43 = vld [vmem:[%s1580_s2 + $0x80] sm:$0xff] }
  0xf1   :  { %924 = vmatpush.xpose.msk.msrb.mxu3 %vm596_vm4, %v303_v24  ;;  %v92_v24 = vld [vmem:[%s1580_s2 + $0x60] sm:$0xff] }
  0xf2   :  { %899 = vmatmul.msk.f32.gmra.mxu2 %vm375_vm3, %v92_v24 }
  0xf3   :  { %v350_v26 = vpop.f32.mrf.mxu1 }
  0xf4   :  { %v351_v1 = vadd.f32 %v1288_v53, %v350_v26  ;;  %v580_v26 = vadd.f32 %v1476_v21, %v579_v13  ;;  %v100_v13 = vld [vmem:[%s1580_s2 + $0xa0] sm:$0xff] }
  0xf5   :  { %925 = vmatpush.xpose.msk.msrb.mxu3 %vm596_vm4, %v300_v25  ;;  %v583_v25 = vadd.f32 %v1476_v21, %v582_v19 }
  0xf9   :  { %926 = vmatpush.xpose.msk.msrb.mxu3 %vm596_vm4, %v297_v27  ;;  %v577_v27 = vadd.f32 %v1476_v21, %v576_v5 }
  0xfa   :  { %900 = vmatmul.msk.f32.gmra.mxu2 %vm375_vm3, %v93_v48 }
  0xfb   :  { %v353_v30 = vpop.f32.mrf.mxu1 }
  0xfc   :  { %v354_v63 = vadd.f32 %v1288_v53, %v353_v30  ;;  %v565_v30 = vadd.f32 %v1476_v21, %v1386_v44 }
  0xfd   :  { %927 = vmatpush.xpose.msk.msrb.mxu3 %vm596_vm4, %v294_v29  ;;  %v568_v29 = vadd.f32 %v1476_v21, %v1402_v54  ;;  %v966_v54 = vld [vmem:[%s1581_s3 + $0x1] ss:$0 sm:$0xff] }
 0x101   :  { %928 = vmatpush.xpose.msk.msrb.mxu3 %vm596_vm4, %v291_v33  ;;  %v559_v33 = vadd.f32 %v1476_v21, %v1366_v32  ;;  %v492_v32 = vpop.f32.mrf.mxu2 }
 0x103   :  { %v356_v34 = vpop.f32.mrf.mxu1 }
 0x104   :  { %v357_v60 = vadd.f32 %v1288_v53, %v356_v34  ;;  %v94_v34 = vld [vmem:[%s1580_s2 + $0x70] sm:$0xff] }
 0x105   :  { %929 = vmatpush.xpose.msk.msrb.mxu3 %vm596_vm4, %v288_v36  ;;  %901 = vmatmul.msk.f32.gmra.mxu2 %vm375_vm3, %v94_v34  ;;  %v95_v36 = vld [vmem:[%s1580_s2 + $0x78] sm:$0xff] }
 0x109   :  { %930 = vmatpush.xpose.msk.msrb.mxu3 %vm596_vm4, %v285_v38  ;;  %v495_v37 = vpop.f32.mrf.mxu2 }
 0x10b   :  { %v359_v39 = vpop.f32.mrf.mxu1 }
 0x10c   :  { %v360_v59 = vadd.f32 %v1288_v53, %v359_v39 }
 0x10d   :  { %931 = vmatpush.xpose.msk.msrb.mxu3 %vm596_vm4, %v282_v42  ;;  %902 = vmatmul.msk.f32.gmra.mxu2 %vm375_vm3, %v95_v36 }
 0x111   :  { %932 = vmatpush.xpose.msk.msrb.mxu3 %vm596_vm4, %v279_v45  ;;  %v498_v38 = vpop.f32.mrf.mxu2 }
 0x112   :  { %v499_v19 = vadd.f32 %v1476_v21, %v498_v38 }
 0x113   :  { %v362_v46 = vpop.f32.mrf.mxu1 }
 0x114   :  { %v363_v40 = vadd.f32 %v1288_v53, %v362_v46 }
 0x115   :  { %933 = vmatpush.xpose.msk.msrb.mxu3 %vm596_vm4, %v276_v49  ;;  %903 = vmatmul.msk.f32.gmra.mxu2 %vm375_vm3, %v96_v43 }
 0x119   :  { %934 = vmatpush.xpose.msk.msrb.mxu3 %vm596_vm4, %v273_v52  ;;  %v501_v39 = vpop.f32.mrf.mxu2 }
 0x11a   :  { %v502_v16 = vadd.f32 %v1476_v21, %v501_v39  ;;  %v967_v39 = vld [vmem:[%s1582_s4] ss:$0 sm:$0xff] }
 0x11b   :  { %v365_v57 = vpop.f32.mrf.mxu1 }
 0x11c   :  { %v366_v58 = vadd.f32 %v1288_v53, %v365_v57  ;;  %935 = vmatmul.msk.f32.vlgmr.msrb.gmra.mxu3 %vm596_vm4, %v588_v56  ;;  %v574_v53 = vadd.f32 %v1476_v21, %v573_v0 }
 0x11e   :  { %936 = vmatpush.xpose.msk.msra.mxu0 %vm596_vm4, %v366_v58 }
 0x121   :  { %v504_v28 = vpop.f32.mrf.mxu2 }
 0x122   :  { %937 = vmatpush.xpose.msk.msra.mxu0 %vm596_vm4, %v363_v40 }
 0x126   :  { %938 = vmatpush.xpose.msk.msra.mxu0 %vm596_vm4, %v360_v59  ;;  %v97_v59 = vld [vmem:[%s1580_s2 + $0x88] sm:$0xff] }
 0x127   :  { %904 = vmatmul.msk.f32.gmra.mxu2 %vm375_vm3, %v97_v59 }
 0x129   :  { %v507_v45 = vpop.f32.mrf.mxu2 }
 0x12a   :  { %939 = vmatpush.xpose.msk.msra.mxu0 %vm596_vm4, %v357_v60 }
 0x12e   :  { %940 = vmatpush.xpose.msk.msra.mxu0 %vm596_vm4, %v354_v63  ;;  %v98_v63 = vld [vmem:[%s1580_s2 + $0x90] sm:$0xff] }
 0x12f   :  { %905 = vmatmul.msk.f32.gmra.mxu2 %vm375_vm3, %v98_v63 }
 0x131   :  { %v510_v46 = vpop.f32.mrf.mxu2 }
 0x132   :  { %941 = vmatpush.xpose.msk.msra.mxu0 %vm596_vm4, %v351_v1  ;;  %v511_v15 = vadd.f32 %v1476_v21, %v510_v46  ;;  %v968_v46 = vld [vmem:[%s1582_s4 + $0x1] ss:$0 sm:$0xff]  ;;  %s819_s4 = sshll.u32 %s1032_s24, 4  ;;  %s820_s4 = int_to_ptr.vmem [resolvable:$true] %s819_s4 }
 0x136   :  { %942 = vmatpush.xpose.msk.msra.mxu0 %vm596_vm4, %v348_v4 }
 0x139   :  { %v513_v47 = vpop.f32.mrf.mxu2 }
 0x13a   :  { %943 = vmatpush.xpose.msk.msra.mxu0 %vm596_vm4, %v345_v7  ;;  %v99_v7 = vld [vmem:[%s1580_s2 + $0x98] sm:$0xff] }
 0x13b   :  { %906 = vmatmul.msk.f32.gmra.mxu2 %vm375_vm3, %v99_v7 }
 0x13e   :  { %944 = vmatpush.xpose.msk.msra.mxu0 %vm596_vm4, %v342_v10 }
 0x141   :  { %v516_v49 = vpop.f32.mrf.mxu2 }
 0x142   :  { %945 = vmatpush.xpose.msk.msra.mxu0 %vm596_vm4, %v339_v11  ;;  %v517_v10 = vadd.f32 %v1476_v21, %v516_v49  ;;  %v514_v11 = vadd.f32 %v1476_v21, %v513_v47 }
 0x143   :  { %907 = vmatmul.msk.f32.gmra.mxu2 %vm375_vm3, %v100_v13 }
 0x146   :  { %946 = vmatpush.xpose.msk.msra.mxu0 %vm596_vm4, %v336_v17  ;;  %v508_v17 = vadd.f32 %v1476_v21, %v507_v45 }
 0x14a   :  { %947 = vmatpush.xpose.msk.msra.mxu0 %vm596_vm4, %v333_v18  ;;  %v505_v18 = vadd.f32 %v1476_v21, %v504_v28 }
 0x14e   :  { %948 = vmatpush.xpose.msk.msra.mxu0 %vm596_vm4, %v330_v20  ;;  %v496_v20 = vadd.f32 %v1476_v21, %v495_v37 }
 0x152   :  { %949 = vmatpush.xpose.msk.msra.mxu0 %vm596_vm4, %v327_v14  ;;  %v493_v14 = vadd.f32 %v1476_v21, %v492_v32 }
 0x156   :  { %950 = vmatpush.xpose.msk.msra.mxu0 %vm596_vm4, %v324_v9 }
 0x157   :  { %v519_v51 = vpop.f32.mrf.mxu2 }
 0x158   :  { %v520_v8 = vadd.f32 %v1476_v21, %v519_v51 }
 0x15a   :  { %951 = vmatpush.xpose.msk.msra.mxu0 %vm596_vm4, %v321_v23 }
 0x15d   :  { %952 = vmatmul.msk.f32.vlgmr.msra.gmra.mxu0 %vm596_vm4, %v589_v3 }
 0x15e   :  { %791 = vmatpush.msrb.mxu0 %v586_v6 }
 0x15f   :  { %v522_v52 = vpop.f32.mrf.mxu2 }
 0x160   :  { %792 = vmatpush.msrb.mxu0 %v583_v25  ;;  %v523_v5 = vadd.f32 %v1476_v21, %v522_v52 }
 0x162   :  { %793 = vmatpush.msrb.mxu0 %v580_v26 }
 0x164   :  { %794 = vmatpush.msrb.mxu0 %v577_v27 }
 0x166   :  { %795 = vmatpush.msrb.mxu0 %v574_v53 }
 0x167   :  { %v525_v56 = vpop.f32.mrf.mxu2 }
 0x168   :  { %796 = vmatpush.msrb.mxu0 %v571_v62  ;;  %v526_v4 = vadd.f32 %v1476_v21, %v525_v56 }
 0x16a   :  { %797 = vmatpush.msrb.mxu0 %v568_v29 }
 0x16c   :  { %798 = vmatpush.msrb.mxu0 %v565_v30 }
 0x16e   :  { %799 = vmatpush.msrb.mxu0 %v562_v31 }
 0x170   :  { %800 = vmatpush.msrb.mxu0 %v559_v33 }
 0x172   :  { %801 = vmatpush.msrb.mxu0 %v556_v35 }
 0x175   :  { %v528_v58 = vpop.f32.mrf.mxu2 }
 0x176   :  { %v529_v1 = vadd.f32 %v1476_v21, %v528_v58 }
 0x17d   :  { %v531_v40 = vpop.f32.mrf.mxu2 }
 0x17e   :  { %v532_v2 = vadd.f32 %v1476_v21, %v531_v40 }
 0x188   :  { %v534_v50 = vpop.f32.mrf.mxu2 }
 0x189   :  { %v535_v0 = vadd.f32 %v1476_v21, %v534_v50 }
 0x190   :  { %v537_v60 = vpop.f32.mrf.mxu2 }
 0x191   :  { %v538_v61 = vadd.f32 %v1476_v21, %v537_v60 }
 0x193   :  { %771 = vmatpush.msra.mxu3 %v538_v61 }
 0x195   :  { %772 = vmatpush.msra.mxu3 %v535_v0 }
 0x197   :  { %773 = vmatpush.msra.mxu3 %v532_v2 }
 0x198   :  { %v540_v26 = vpop.f32.mrf.mxu2 }
 0x199   :  { %774 = vmatpush.msra.mxu3 %v529_v1  ;;  %v541_v34 = vadd.f32 %v1476_v21, %v540_v26 }
 0x19b   :  { %775 = vmatpush.msra.mxu3 %v526_v4 }
 0x19d   :  { %776 = vmatpush.msra.mxu3 %v523_v5 }
 0x19f   :  { %v665_v42 = vpop.f32.mrf.mxu3  ;;  %777 = vmatpush.msra.mxu3 %v520_v8 }
 0x1a0   :  { %v666_v44 = vadd.f32 %v965_v41, %v665_v42 }
 0x1a1   :  { %778 = vmatpush.msra.mxu3 %v517_v10 }
 0x1a2   :  { %739 = vmax.xlane.f32.xlu0 %v666_v44 }
 0x1a3   :  { %779 = vmatpush.msra.mxu3 %v514_v11 }
 0x1a5   :  { %780 = vmatpush.msra.mxu3 %v511_v15 }
 0x1a7   :  { %781 = vmatpush.msra.mxu3 %v508_v17 }
 0x1a9   :  { %782 = vmatpush.msra.mxu3 %v505_v18 }
 0x1aa   :  { %v543_v27 = vpop.f32.mrf.mxu2 }
 0x1ab   :  { %783 = vmatpush.msra.mxu3 %v502_v16  ;;  %v544_v33 = vadd.f32 %v1476_v21, %v543_v27 }
 0x1ad   :  { %784 = vmatpush.msra.mxu3 %v499_v19 }
 0x1af   :  { %785 = vmatpush.msra.mxu3 %v496_v20 }
 0x1b1   :  { %786 = vmatpush.msra.mxu3 %v493_v14 }
 0x1b2   :  { %v546_v53 = vpop.f32.mrf.mxu2 }
 0x1b3   :  { %v547_v31 = vadd.f32 %v1476_v21, %v546_v53 }
 0x1be   :  { %v549_v62 = vpop.f32.mrf.mxu2 }
 0x1bf   :  { %v550_v29 = vadd.f32 %v1476_v21, %v549_v62 }
 0x1c6   :  { %v552_v48 = vpop.f32.mrf.mxu2 }
 0x1c7   :  { %v553_v30 = vadd.f32 %v1476_v21, %v552_v48 }
 0x1c9   :  { %802 = vmatpush.msrb.mxu0 %v553_v30 }
 0x1cb   :  { %803 = vmatpush.msrb.mxu0 %v550_v29 }
 0x1cd   :  { %804 = vmatpush.msrb.mxu0 %v547_v31 }
 0x1cf   :  { %805 = vmatpush.msrb.mxu0 %v544_v33 }
 0x1d1   :  { %806 = vmatpush.msrb.mxu0 %v541_v34 }
 0x1da   :  { %v736_v57 = vpop.f32.mrf.mxu0 }
 0x1db   :  { %v737_v55 = vadd.f32 %v966_v54, %v736_v57 }
 0x1dd   :  { %741 = vmax.xlane.f32.xlu0 %v737_v55 }
 0x215   :  { %v740_v12 = vpop.xlane.xlu0 %739 }
 0x216   :  { %v743_v9 = vsub.f32 %v666_v44, %v740_v12 }
 0x218   :  { %v745_v22 = vmul.f32 1.442695, %v743_v9 }
 0x21a   :  { %969 = vpow2.f32 %v745_v22 }
 0x220   :  { %v970_v6 = vpop.eup %969 }
 0x221   :  { %749 = vadd.xlane.f32.xlu1 %v970_v6 }
 0x250   :  { %v742_v23 = vpop.xlane.xlu0 %741 }
 0x251   :  { %v744_v24 = vsub.f32 %v737_v55, %v742_v23 }
 0x253   :  { %v747_v25 = vmul.f32 1.442695, %v744_v24 }
 0x255   :  { %971 = vpow2.f32 %v747_v25 }
 0x25b   :  { %v972_v3 = vpop.eup %971 }
 0x25c   :  { %751 = vadd.xlane.f32.xlu1 %v972_v3 }
 0x294   :  { %v750_v35 = vpop.xlane.xlu1 %749 }
 0x295   :  { %973 = vrcp.f32 %v750_v35 }
 0x29b   :  { %v974_v36 = vpop.eup %973 }
 0x29c   :  { %v755_v32 = vmul.f32 %v974_v36, %v750_v35 }
 0x29e   :  { %v757_v37 = vsub.f32 2.0, %v755_v32 }
 0x2a0   :  { %v759_v38 = vmul.f32 %v974_v36, %v757_v37 }
 0x2a2   :  { %v761_v41 = vmul.f32 %v970_v6, %v759_v38 }
 0x2a4   :  { %v769_v28 = vmul.f32 %v967_v39, %v761_v41 }
 0x2a6   :  { %787 = vmatmul.f32.vlgmr.msra.gmra.mxu3 %v769_v28  ;;  %813 = vst [vmem:[#allocation4] sm:$0xff] %v769_v28 }
 0x2cf   :  { %v752_v42 = vpop.xlane.xlu1 %751 }
 0x2d0   :  { %975 = vrcp.f32 %v752_v42 }
 0x2d6   :  { %v976_v21 = vpop.eup %975 }
 0x2d7   :  { %v756_v44 = vmul.f32 %v976_v21, %v752_v42 }
 0x2d9   :  { %v758_v45 = vsub.f32 2.0, %v756_v44 }
 0x2db   :  { %v760_v47 = vmul.f32 %v976_v21, %v758_v45 }
 0x2dd   :  { %v762_v49 = vmul.f32 %v972_v3, %v760_v47 }
 0x2df   :  { %v770_v51 = vmul.f32 %v968_v46, %v762_v49 }
 0x2e1   :  { %814 = vst [vmem:[#allocation4 + $0x8] sm:$0xff] %v770_v51  ;;  %807 = vmatmul.f32.vlgmr.msrb.gmra.mxu0 %v770_v51 }
 0x2e2   :  { %840 = dma.vmem_to_hbm [thread:$0]  %s833_s20, 256, %s835_s10, [#allocation5], %s1030_s22, %s1030_s22, %s1031_s23  }
 0x329   :  { %v788_v52 = vpop.f32.mrf.mxu3 }
 0x32a   :  { %811 = vst [vmem:[#allocation2] sm:$0xff] %v788_v52 }
 0x35e   :  { %v808_v54 = vpop.f32.mrf.mxu0 }
 0x35f   :  { %812 = vst [vmem:[#allocation2 + $0x8] sm:$0xff] %v808_v54 }
 0x360   :  { %827 = dma.vmem_to_hbm [thread:$0]  %s820_s4, 256, %s822_s26, [#allocation3], %s1030_s22, %s1030_s22, %s1031_s23  }
 0x361   :  { %1025 = dma.done.wait [#allocation3], 256  }
 0x362   :  { %1026 = vsyncadd [#allocation3], 4294967040 }
 0x363   :  { %1027 = dma.done.wait [#allocation5], 256  }
 0x364   :  { %1028 = vsyncadd [#allocation5], 4294967040 }
 0x365   :  { %849 = vsyncpa [#allocation3], 1 }
 0x366   :  { %850 = vsyncpa [#allocation5], 1 }

</bundles_post_ra>
